<compile_context>
chip_gen: v6e
topology: v6e:2x2x1
jax: 0.10.0
libtpu: 0.0.40
codegen_flags: <defaults>
</compile_context>

<pallas_src>
import math

import jax
import jax.numpy as jnp
from jax import lax
from jax.experimental import pallas as pl
from jax.experimental.pallas import tpu as pltpu

TILE_M = 2048      # rows per block (x 128 lanes x 4 B = 1 MiB per f32 block)
LANE = 128
K_UNIF = 6         # Irwin-Hall draws per element (sum of K uniforms ~ normal)
_Z_SCALE = math.sqrt(12.0 / K_UNIF)   # rescale Irwin-Hall sum to unit variance


def poisson_noise_kernel(seed_ref, x_ref, o_ref):
    shape = x_ref.shape                      # static (tile_m, LANE)
    lam = x_ref[...].astype(jnp.float32) * 255.0

    # Per-element counter: global element index, decorrelated across tiles.
    row = lax.broadcasted_iota(jnp.int32, shape, 0)
    col = lax.broadcasted_iota(jnp.int32, shape, 1)
    base = pl.program_id(0) * shape[0]
    cnt = (base + row) * shape[1] + col      # int32 counter

    # Counter-based PRNG in pure jnp (lowers on Mosaic and the interpreter):
    # murmur3-style finalizer keyed by the seed -> well-mixed 32-bit state.
    seed_i = seed_ref[0]                     # int32 scalar (SMEM prefetch)
    h = lax.bitcast_convert_type(jnp.bitwise_xor(cnt, seed_i), jnp.uint32)
    h = h ^ (h >> 16)
    h = h * jnp.uint32(0x85EBCA6B)
    h = h ^ (h >> 13)
    h = h * jnp.uint32(0xC2B2AE35)
    h = h ^ (h >> 16)

    # Derive K_UNIF uniforms via the exponent bit-trick: top 23 bits into the
    # mantissa of a float in [1, 2); extra draws come from a PCG-LCG step.
    acc = jnp.zeros(shape, jnp.float32)
    state = h
    for k in range(K_UNIF):
        mant = (state >> 9) | jnp.uint32(0x3F800000)
        acc = acc + lax.bitcast_convert_type(mant, jnp.float32)
        if k + 1 < K_UNIF:
            state = state * jnp.uint32(747796405) + jnp.uint32(2891336453)

    # Irwin-Hall sum of K uniforms in [1,2): mean 1.5*K, var K/12 -> ~N(0,1).
    z = (acc - (1.5 * K_UNIF)) * _Z_SCALE

    # TODO(synk): exact torch.poisson (data-dependent rejection/inversion
    # sampling) has no clean Pallas equivalent; use the normal approximation
    # with continuity correction: Poisson(lam) ~ floor(lam + sqrt(lam)*z + .5).
    noise = jnp.floor(lam + jnp.sqrt(jnp.maximum(lam, 0.0)) * z + 0.5)
    o_ref[...] = jnp.clip(noise * (1.0 / 255.0), 0.0, 1.0).astype(o_ref.dtype)


def apply_poisson_noise(x, seed):
    """The Pallas hot path: clamp(PoissonApprox(x*255)/255, 0, 1), elementwise."""
    orig_shape = x.shape
    n = x.size

    flat = x.reshape(-1)
    pad = (-n) % LANE
    if pad:                                  # only pad when n % 128 != 0
        flat = jnp.pad(flat, (0, pad))
    mat = flat.reshape(-1, LANE)
    m_rows = mat.shape[0]

    # Big lane-dense blocks; ragged last block (if any) is masked by Pallas.
    tile_m = min(TILE_M, m_rows)
    grid = (pl.cdiv(m_rows, tile_m),)

    seed_arr = jnp.asarray(seed, dtype=jnp.int32).reshape((1,))

    out = pl.pallas_call(
        poisson_noise_kernel,
        out_shape=jax.ShapeDtypeStruct((m_rows, LANE), x.dtype),
        grid_spec=pltpu.PrefetchScalarGridSpec(
            num_scalar_prefetch=1,
            grid=grid,
            in_specs=[pl.BlockSpec((tile_m, LANE), lambda i, seed: (i, 0))],
            out_specs=pl.BlockSpec((tile_m, LANE), lambda i, seed: (i, 0)),
        ),
        compiler_params=pltpu.CompilerParams(
            dimension_semantics=("parallel",)),
    )(seed_arr, mat)

    return out.reshape(-1)[:n].reshape(orig_shape)


def random_poisson_noise(x, key, p=0.15, training=True):
    """Full module semantics: Bernoulli(p) gate + Poisson noise."""
    if not training:                         # static eval-mode short-circuit
        return x
    gate_key, seed_key = jax.random.split(key)
    coin = jax.random.uniform(gate_key)
    seed = jax.random.randint(seed_key, (), 0, 2**31 - 1, dtype=jnp.int32)
    # lax.cond skips the kernel entirely when the coin fails (85% of calls).
    return lax.cond(coin <= p,
                    lambda op: apply_poisson_noise(op, seed),
                    lambda op: op,
                    x)


if __name__ == "__main__":
    key = jax.random.PRNGKey(0)
    kx, knoise = jax.random.split(key)

    # NCHW, matching the PyTorch convention for image tensors in [0, 1].
    x = jax.random.uniform(kx, (2, 4, 16, 16), dtype=jnp.float32)

    # Run the Pallas hot path directly once (guaranteed execution).
    y = jax.block_until_ready(apply_poisson_noise(x, jnp.int32(1234)))
    assert y.shape == x.shape and y.dtype == x.dtype
    assert bool(jnp.all((y >= 0.0) & (y <= 1.0)))

    # Full module semantics (stochastic gate, as in forward()).
    y2 = jax.block_until_ready(
        random_poisson_noise(x, knoise, p=0.15, training=True))
    assert y2.shape == x.shape and y2.dtype == x.dtype

    print("KERNEL_OK")
</pallas_src>

<mosaic_0001>
module attributes {stable_mosaic.version = 11 : i64} {
  func.func @poisson_noise_kernel(%arg0: i32, %arg1: memref<1xi32, #tpu.memory_space<smem>>, %arg2: memref<16x128xf32, #tpu.memory_space<vmem>>, %arg3: memref<16x128xf32, #tpu.memory_space<vmem>>) attributes {dimension_semantics = [#tpu.dimension_semantics<parallel>], iteration_bounds = array<i64: 1>, scalar_prefetch = 1 : i64, scratch_operands = 0 : i64, tpu.core_type = #tpu.core_type<tc>, window_params = [{transform_indices = @transform_0, window_bounds = array<i64: 16, 128>}, {transform_indices = @transform_1, window_bounds = array<i64: 16, 128>}]} {
    %c0 = arith.constant 0 : index
    %c0_0 = arith.constant 0 : index
    %0 = vector.load %arg2[%c0, %c0_0] : memref<16x128xf32, #tpu.memory_space<vmem>>, vector<16x128xf32>
    %cst = arith.constant 2.550000e+02 : f32
    %1 = vector.broadcast %cst : f32 to vector<16x128xf32>
    %2 = arith.mulf %0, %1 : vector<16x128xf32>
    %3 = tpu.iota {dimensions = array<i32: 0>} : vector<16x128xi32>
    %4 = tpu.iota {dimensions = array<i32: 1>} : vector<16x128xi32>
    %c16_i32 = arith.constant 16 : i32
    %5 = arith.muli %arg0, %c16_i32 : i32
    %6 = vector.broadcast %5 : i32 to vector<16x128xi32>
    %7 = arith.addi %6, %3 : vector<16x128xi32>
    %c128_i32 = arith.constant 128 : i32
    %8 = vector.broadcast %c128_i32 : i32 to vector<16x128xi32>
    %9 = arith.muli %7, %8 : vector<16x128xi32>
    %10 = arith.addi %9, %4 : vector<16x128xi32>
    %c0_1 = arith.constant 0 : index
    %11 = memref.load %arg1[%c0_1] : memref<1xi32, #tpu.memory_space<smem>>
    %12 = vector.broadcast %11 : i32 to vector<16x128xi32>
    %13 = arith.xori %10, %12 : vector<16x128xi32>
    %14 = tpu.bitcast %13 : vector<16x128xi32> -> vector<16x128xi32>
    %c16_i32_2 = arith.constant 16 : i32
    %15 = vector.broadcast %c16_i32_2 : i32 to vector<16x128xi32>
    %16 = arith.shrui %14, %15 : vector<16x128xi32>
    %17 = arith.xori %14, %16 : vector<16x128xi32>
    %c-2048144789_i32 = arith.constant -2048144789 : i32
    %18 = vector.broadcast %c-2048144789_i32 : i32 to vector<16x128xi32>
    %19 = arith.muli %17, %18 : vector<16x128xi32>
    %c13_i32 = arith.constant 13 : i32
    %20 = vector.broadcast %c13_i32 : i32 to vector<16x128xi32>
    %21 = arith.shrui %19, %20 : vector<16x128xi32>
    %22 = arith.xori %19, %21 : vector<16x128xi32>
    %c-1028477387_i32 = arith.constant -1028477387 : i32
    %23 = vector.broadcast %c-1028477387_i32 : i32 to vector<16x128xi32>
    %24 = arith.muli %22, %23 : vector<16x128xi32>
    %c16_i32_3 = arith.constant 16 : i32
    %25 = vector.broadcast %c16_i32_3 : i32 to vector<16x128xi32>
    %26 = arith.shrui %24, %25 : vector<16x128xi32>
    %27 = arith.xori %24, %26 : vector<16x128xi32>
    %cst_4 = arith.constant 0.000000e+00 : f32
    %28 = vector.broadcast %cst_4 : f32 to vector<16x128xf32>
    %c9_i32 = arith.constant 9 : i32
    %29 = vector.broadcast %c9_i32 : i32 to vector<16x128xi32>
    %30 = arith.shrui %27, %29 : vector<16x128xi32>
    %c1065353216_i32 = arith.constant 1065353216 : i32
    %31 = vector.broadcast %c1065353216_i32 : i32 to vector<16x128xi32>
    %32 = arith.ori %30, %31 : vector<16x128xi32>
    %33 = tpu.bitcast %32 : vector<16x128xi32> -> vector<16x128xf32>
    %34 = arith.addf %28, %33 : vector<16x128xf32>
    %c747796405_i32 = arith.constant 747796405 : i32
    %35 = vector.broadcast %c747796405_i32 : i32 to vector<16x128xi32>
    %36 = arith.muli %27, %35 : vector<16x128xi32>
    %c-1403630843_i32 = arith.constant -1403630843 : i32
    %37 = vector.broadcast %c-1403630843_i32 : i32 to vector<16x128xi32>
    %38 = arith.addi %36, %37 : vector<16x128xi32>
    %c9_i32_5 = arith.constant 9 : i32
    %39 = vector.broadcast %c9_i32_5 : i32 to vector<16x128xi32>
    %40 = arith.shrui %38, %39 : vector<16x128xi32>
    %c1065353216_i32_6 = arith.constant 1065353216 : i32
    %41 = vector.broadcast %c1065353216_i32_6 : i32 to vector<16x128xi32>
    %42 = arith.ori %40, %41 : vector<16x128xi32>
    %43 = tpu.bitcast %42 : vector<16x128xi32> -> vector<16x128xf32>
    %44 = arith.addf %34, %43 : vector<16x128xf32>
    %c747796405_i32_7 = arith.constant 747796405 : i32
    %45 = vector.broadcast %c747796405_i32_7 : i32 to vector<16x128xi32>
    %46 = arith.muli %38, %45 : vector<16x128xi32>
    %c-1403630843_i32_8 = arith.constant -1403630843 : i32
    %47 = vector.broadcast %c-1403630843_i32_8 : i32 to vector<16x128xi32>
    %48 = arith.addi %46, %47 : vector<16x128xi32>
    %c9_i32_9 = arith.constant 9 : i32
    %49 = vector.broadcast %c9_i32_9 : i32 to vector<16x128xi32>
    %50 = arith.shrui %48, %49 : vector<16x128xi32>
    %c1065353216_i32_10 = arith.constant 1065353216 : i32
    %51 = vector.broadcast %c1065353216_i32_10 : i32 to vector<16x128xi32>
    %52 = arith.ori %50, %51 : vector<16x128xi32>
    %53 = tpu.bitcast %52 : vector<16x128xi32> -> vector<16x128xf32>
    %54 = arith.addf %44, %53 : vector<16x128xf32>
    %c747796405_i32_11 = arith.constant 747796405 : i32
    %55 = vector.broadcast %c747796405_i32_11 : i32 to vector<16x128xi32>
    %56 = arith.muli %48, %55 : vector<16x128xi32>
    %c-1403630843_i32_12 = arith.constant -1403630843 : i32
    %57 = vector.broadcast %c-1403630843_i32_12 : i32 to vector<16x128xi32>
    %58 = arith.addi %56, %57 : vector<16x128xi32>
    %c9_i32_13 = arith.constant 9 : i32
    %59 = vector.broadcast %c9_i32_13 : i32 to vector<16x128xi32>
    %60 = arith.shrui %58, %59 : vector<16x128xi32>
    %c1065353216_i32_14 = arith.constant 1065353216 : i32
    %61 = vector.broadcast %c1065353216_i32_14 : i32 to vector<16x128xi32>
    %62 = arith.ori %60, %61 : vector<16x128xi32>
    %63 = tpu.bitcast %62 : vector<16x128xi32> -> vector<16x128xf32>
    %64 = arith.addf %54, %63 : vector<16x128xf32>
    %c747796405_i32_15 = arith.constant 747796405 : i32
    %65 = vector.broadcast %c747796405_i32_15 : i32 to vector<16x128xi32>
    %66 = arith.muli %58, %65 : vector<16x128xi32>
    %c-1403630843_i32_16 = arith.constant -1403630843 : i32
    %67 = vector.broadcast %c-1403630843_i32_16 : i32 to vector<16x128xi32>
    %68 = arith.addi %66, %67 : vector<16x128xi32>
    %c9_i32_17 = arith.constant 9 : i32
    %69 = vector.broadcast %c9_i32_17 : i32 to vector<16x128xi32>
    %70 = arith.shrui %68, %69 : vector<16x128xi32>
    %c1065353216_i32_18 = arith.constant 1065353216 : i32
    %71 = vector.broadcast %c1065353216_i32_18 : i32 to vector<16x128xi32>
    %72 = arith.ori %70, %71 : vector<16x128xi32>
    %73 = tpu.bitcast %72 : vector<16x128xi32> -> vector<16x128xf32>
    %74 = arith.addf %64, %73 : vector<16x128xf32>
    %c747796405_i32_19 = arith.constant 747796405 : i32
    %75 = vector.broadcast %c747796405_i32_19 : i32 to vector<16x128xi32>
    %76 = arith.muli %68, %75 : vector<16x128xi32>
    %c-1403630843_i32_20 = arith.constant -1403630843 : i32
    %77 = vector.broadcast %c-1403630843_i32_20 : i32 to vector<16x128xi32>
    %78 = arith.addi %76, %77 : vector<16x128xi32>
    %c9_i32_21 = arith.constant 9 : i32
    %79 = vector.broadcast %c9_i32_21 : i32 to vector<16x128xi32>
    %80 = arith.shrui %78, %79 : vector<16x128xi32>
    %c1065353216_i32_22 = arith.constant 1065353216 : i32
    %81 = vector.broadcast %c1065353216_i32_22 : i32 to vector<16x128xi32>
    %82 = arith.ori %80, %81 : vector<16x128xi32>
    %83 = tpu.bitcast %82 : vector<16x128xi32> -> vector<16x128xf32>
    %84 = arith.addf %74, %83 : vector<16x128xf32>
    %cst_23 = arith.constant 9.000000e+00 : f32
    %85 = vector.broadcast %cst_23 : f32 to vector<16x128xf32>
    %86 = arith.subf %84, %85 : vector<16x128xf32>
    %cst_24 = arith.constant 1.41421354 : f32
    %87 = vector.broadcast %cst_24 : f32 to vector<16x128xf32>
    %88 = arith.mulf %86, %87 : vector<16x128xf32>
    %cst_25 = arith.constant 0.000000e+00 : f32
    %89 = vector.broadcast %cst_25 : f32 to vector<16x128xf32>
    %90 = arith.maximumf %2, %89 : vector<16x128xf32>
    %91 = math.sqrt %90 : vector<16x128xf32>
    %92 = arith.mulf %91, %88 : vector<16x128xf32>
    %93 = arith.addf %2, %92 : vector<16x128xf32>
    %cst_26 = arith.constant 5.000000e-01 : f32
    %94 = vector.broadcast %cst_26 : f32 to vector<16x128xf32>
    %95 = arith.addf %93, %94 : vector<16x128xf32>
    %96 = math.floor %95 : vector<16x128xf32>
    %cst_27 = arith.constant 0.00392156886 : f32
    %97 = vector.broadcast %cst_27 : f32 to vector<16x128xf32>
    %98 = arith.mulf %96, %97 : vector<16x128xf32>
    %cst_28 = arith.constant 0.000000e+00 : f32
    %cst_29 = arith.constant 1.000000e+00 : f32
    %99 = vector.broadcast %cst_28 : f32 to vector<16x128xf32>
    %100 = arith.maximumf %99, %98 : vector<16x128xf32>
    %101 = vector.broadcast %cst_29 : f32 to vector<16x128xf32>
    %102 = arith.minimumf %101, %100 : vector<16x128xf32>
    %c0_30 = arith.constant 0 : index
    %c0_31 = arith.constant 0 : index
    %103 = vector.load %arg3[%c0_30, %c0_31] : memref<16x128xf32, #tpu.memory_space<vmem>>, vector<16x128xf32>
    tpu.vector_store %arg3[%c0_30, %c0_31], %102 {strides = array<i32>} : memref<16x128xf32, #tpu.memory_space<vmem>>, vector<16x128xf32>,
    return
  }
  func.func @transform_0(%arg0: i32, %arg1: memref<1xi32, #tpu.memory_space<smem>>) -> (i32, i32) {
    %c0_i32 = arith.constant 0 : i32
    %c0_i32_0 = arith.constant 0 : i32
    return %arg0, %c0_i32 : i32, i32
  }
  func.func @transform_1(%arg0: i32, %arg1: memref<1xi32, #tpu.memory_space<smem>>) -> (i32, i32) {
    %c0_i32 = arith.constant 0 : i32
    %c0_i32_0 = arith.constant 0 : i32
    return %arg0, %c0_i32 : i32, i32
  }
}

</mosaic_0001>

<bundles_post_ra>
// kernel: tpu_custom_call.1
= control target key start
LH: loop header
LB: loop body
LE: loop exit
PB: predicated region body
PF: predicated region fallthrough
CT: control target
= control target key end

     0   :  { %8 = vsyncpa [#allocation5], 0  ;;  %s295_s0 = inlined_call_operand.<no memory space> [shape: s32[1], index: 0, kind: input, shape index: {}]   ;;  %s296_s1 = inlined_call_operand.hbm [shape: f32[16,128], index: 1, kind: input, shape index: {}]   ;;  %s297_s2 = inlined_call_operand.hbm [shape: f32[16,128], index: 2, kind: output, shape index: {}]  }
   0x1   :  { %9 = vsyncpa [#allocation6], 0  ;;  %s237_s9 = smov [#allocation4]  }
   0x2   :  { %s15_s10 = sshll.u32 %s237_s9, 4  ;;  %s16_s10 = int_to_ptr.vmem [resolvable:$true] %s15_s10 }
   0x3   :  { %s201_s11 = scalar_lea.vmem %s16_s10, 256  ;;  %p206_p1 = scmp.lt.s32.totalorder %s16_s10, %s16_s10 }
   0x4   :  { %p202_p0 = scmp.ne.s32.totalorder %s16_s10, %s201_s11  ;;  %p207_p2 = scmp.lt.s32.totalorder %s201_s11, %s201_s11 }
   0x6   :  { %p208_p3 = por %p207_p2, %p206_p1 }
   0x8   :  { %p209_p4 = pnand %p208_p3, %p202_p0 }
   0xa   :  { %212 = shalt.err (!%p209_p4)
}
   0xb   :  { %s238_s12 = smov 128   ;;  %s239_s13 = smov 8  }
   0xc   :  { %21 = dma.hbm_to_vmem [thread:$0]  %s296_s1, 256, %s16_s10, [#allocation5], %s238_s12, %s238_s12, %s239_s13  }
   0xd   :  { %233 = dma.done.wait [#allocation5], 256  }
   0xe   :  { %234 = vsyncadd [#allocation5], 4294967040  ;;  %v29_v0 = vlaneseq  ;;  %v43_v5 = vstv %s295_s0  ;;  %v25_v19 = vld [vmem:[#allocation4] sm:$0xff]  ;;  %v26_v25 = vld [vmem:[#allocation4 + $0x8] sm:$0xff]  ;;  %s240_s0 = smov [#allocation7]  }
   0xf   :  { %v265_v23 = vmul.f32 255.0, %v25_v19  ;;  %v267_v28 = vmul.f32 255.0, %v26_v25  ;;  %s171_s1 = sshll.u32 %s240_s0, 4  ;;  %s172_s1 = int_to_ptr.vmem [resolvable:$true] %s171_s1 }
  0x10   :  { %v30_v1 = vshrl.u32 %v29_v0, 7  ;;  %v33_v2 = vand.u32 127, %v29_v0  ;;  %s213_s18 = scalar_lea.vmem %s172_s1, 256  ;;  %p218_p6 = scmp.lt.s32.totalorder %s172_s1, %s172_s1 }
  0x11   :  { %v270_v32 = vmax.f32 %v265_v23, 0.0  ;;  %v273_v37 = vmax.f32 %v267_v28, 0.0  ;;  %p214_p5 = scmp.ne.s32.totalorder %s172_s1, %s213_s18  ;;  %p219_p7 = scmp.lt.s32.totalorder %s213_s18, %s213_s18 }
  0x12   :  { %v38_v3 = vmul.u32 128, %v30_v1  ;;  %v31_v4 = vadd.s32 8, %v30_v1 }
  0x13   :  { %189 = vrsqrt.f32 %v270_v32  ;;  %vm138_vm0 = vcmp.eq.f32.partialorder %v270_v32, inf  ;;  %vm140_vm1 = vcmp.eq.f32.partialorder %v270_v32, 0.0  ;;  %vm145_vm2 = vcmp.eq.f32.partialorder %v273_v37, inf  ;;  %p220_p8 = por %p219_p7, %p218_p6 }
  0x14   :  { %v40_v6 = vadd.s32 %v38_v3, %v33_v2  ;;  %v39_v7 = vmul.u32 128, %v31_v4  ;;  %191 = vrsqrt.f32 %v273_v37  ;;  %vm147_vm3 = vcmp.eq.f32.partialorder %v273_v37, 0.0 }
  0x15   :  { %p221_p9 = pnand %p220_p8, %p214_p5 }
  0x16   :  { %v44_v8 = vxor.u32 %v43_v5, %v40_v6  ;;  %v41_v9 = vadd.s32 %v39_v7, %v33_v2 }
  0x18   :  { %v46_v10 = vshrl.u32 %v44_v8, 16  ;;  %v45_v11 = vxor.u32 %v43_v5, %v41_v9 }
  0x1a   :  { %v48_v12 = vxor.u32 %v46_v10, %v44_v8  ;;  %v47_v13 = vshrl.u32 %v45_v11, 16 }
  0x1c   :  { %v50_v14 = vmul.u32 2246822507, %v48_v12  ;;  %v49_v15 = vxor.u32 %v47_v13, %v45_v11 }
  0x1e   :  { %v52_v16 = vshrl.u32 %v50_v14, 13  ;;  %v51_v17 = vmul.u32 2246822507, %v49_v15 }
  0x20   :  { %v54_v18 = vxor.u32 %v52_v16, %v50_v14  ;;  %v53_v20 = vshrl.u32 %v51_v17, 13  ;;  %v190_v6 = vpop.eup %189 }
  0x21   :  { %v192_v14 = vpop.eup %191 }
  0x22   :  { %v56_v21 = vmul.u32 3266489909, %v54_v18  ;;  %v55_v22 = vxor.u32 %v53_v20, %v51_v17  ;;  %v137_v17 = vmul.f32 %v190_v6, %v270_v32  ;;  %v144_v25 = vmul.f32 %v192_v14, %v273_v37 }
  0x24   :  { %v58_v24 = vshrl.u32 %v56_v21, 16  ;;  %v57_v26 = vmul.u32 3266489909, %v55_v22 }
  0x26   :  { %v60_v27 = vxor.u32 %v58_v24, %v56_v21  ;;  %v59_v29 = vshrl.u32 %v57_v26, 16  ;;  %v141_v21 = vand.u32 2147483648, %v270_v32 }
  0x28   :  { %v62_v30 = vshrl.u32 %v60_v27, 9  ;;  %v70_v31 = vmul.u32 747796405, %v60_v27  ;;  %v61_v33 = vxor.u32 %v59_v29, %v57_v26  ;;  %v139_v27 = vsel %vm138_vm0, %v270_v32, %v137_v17 }
  0x2a   :  { %v72_v34 = vadd.s32 2891336453, %v70_v31  ;;  %v63_v35 = vshrl.u32 %v61_v33, 9  ;;  %v71_v36 = vmul.u32 747796405, %v61_v33  ;;  %v64_v38 = vor.u32 1065353216, %v62_v30 }
  0x2b   :  { %v148_v31 = vand.u32 2147483648, %v273_v37  ;;  %v142_v33 = vsel %vm140_vm1, %v141_v21, %v139_v27 }
  0x2c   :  { %v74_v39 = vshrl.u32 %v72_v34, 9  ;;  %v82_v40 = vmul.u32 747796405, %v72_v34  ;;  %v73_v41 = vadd.s32 2891336453, %v71_v36  ;;  %v65_v44 = vor.u32 1065353216, %v63_v35 }
  0x2d   :  { %v146_v35 = vsel %vm145_vm2, %v273_v37, %v144_v25 }
  0x2e   :  { %v76_v42 = vor.u32 1065353216, %v74_v39  ;;  %v84_v43 = vadd.s32 2891336453, %v82_v40  ;;  %v75_v45 = vshrl.u32 %v73_v41, 9  ;;  %v83_v46 = vmul.u32 747796405, %v73_v41 }
  0x2f   :  { %v149_v40 = vsel %vm147_vm3, %v148_v31, %v146_v35 }
  0x30   :  { %v80_v47 = vadd.f32 %v76_v42, %v64_v38  ;;  %v86_v48 = vshrl.u32 %v84_v43, 9  ;;  %v94_v49 = vmul.u32 747796405, %v84_v43  ;;  %v77_v50 = vor.u32 1065353216, %v75_v45 }
  0x31   :  { %v85_v51 = vadd.s32 2891336453, %v83_v46 }
  0x32   :  { %v88_v52 = vor.u32 1065353216, %v86_v48  ;;  %v96_v53 = vadd.s32 2891336453, %v94_v49  ;;  %v81_v54 = vadd.f32 %v77_v50, %v65_v44 }
  0x33   :  { %v87_v55 = vshrl.u32 %v85_v51, 9  ;;  %v95_v56 = vmul.u32 747796405, %v85_v51 }
  0x34   :  { %v92_v57 = vadd.f32 %v88_v52, %v80_v47  ;;  %v98_v58 = vshrl.u32 %v96_v53, 9  ;;  %v106_v59 = vmul.u32 747796405, %v96_v53 }
  0x35   :  { %v89_v60 = vor.u32 1065353216, %v87_v55  ;;  %v97_v61 = vadd.s32 2891336453, %v95_v56 }
  0x36   :  { %v100_v62 = vor.u32 1065353216, %v98_v58  ;;  %v108_v63 = vadd.s32 2891336453, %v106_v59 }
  0x37   :  { %v93_v0 = vadd.f32 %v89_v60, %v81_v54  ;;  %v99_v1 = vshrl.u32 %v97_v61, 9  ;;  %v107_v2 = vmul.u32 747796405, %v97_v61 }
  0x38   :  { %v104_v3 = vadd.f32 %v100_v62, %v92_v57  ;;  %v110_v4 = vshrl.u32 %v108_v63, 9  ;;  %v118_v5 = vmul.u32 747796405, %v108_v63 }
  0x39   :  { %v101_v7 = vor.u32 1065353216, %v99_v1  ;;  %v109_v8 = vadd.s32 2891336453, %v107_v2 }
  0x3a   :  { %v112_v9 = vor.u32 1065353216, %v110_v4  ;;  %v120_v10 = vadd.s32 2891336453, %v118_v5 }
  0x3b   :  { %v105_v11 = vadd.f32 %v101_v7, %v93_v0  ;;  %v111_v12 = vshrl.u32 %v109_v8, 9  ;;  %v119_v13 = vmul.u32 747796405, %v109_v8 }
  0x3c   :  { %v116_v15 = vadd.f32 %v112_v9, %v104_v3  ;;  %v122_v16 = vshrl.u32 %v120_v10, 9 }
  0x3d   :  { %v113_v18 = vor.u32 1065353216, %v111_v12  ;;  %v121_v19 = vadd.s32 2891336453, %v119_v13 }
  0x3e   :  { %v124_v20 = vor.u32 1065353216, %v122_v16 }
  0x3f   :  { %v117_v22 = vadd.f32 %v113_v18, %v105_v11  ;;  %v123_v24 = vshrl.u32 %v121_v19, 9 }
  0x40   :  { %v128_v26 = vadd.f32 %v124_v20, %v116_v15 }
  0x41   :  { %v125_v29 = vor.u32 1065353216, %v123_v24 }
  0x42   :  { %v183_v30 = vadd.f32 -9.0, %v128_v26 }
  0x43   :  { %v129_v34 = vadd.f32 %v125_v29, %v117_v22 }
  0x44   :  { %v132_v36 = vmul.f32 1.4142135, %v183_v30 }
  0x45   :  { %v184_v38 = vadd.f32 -9.0, %v129_v34 }
  0x46   :  { %v150_v39 = vmul.f32 %v142_v33, %v132_v36 }
  0x47   :  { %v133_v41 = vmul.f32 1.4142135, %v184_v38 }
  0x48   :  { %v152_v42 = vadd.f32 %v150_v39, %v265_v23 }
  0x49   :  { %v151_v32 = vmul.f32 %v149_v40, %v133_v41 }
  0x4a   :  { %v154_v43 = vadd.f32 0.5, %v152_v42 }
  0x4b   :  { %v153_v44 = vadd.f32 %v151_v32, %v267_v28 }
  0x4c   :  { %v156_v45 = vfloor.f32 %v154_v43 }
  0x4d   :  { %v155_v46 = vadd.f32 0.5, %v153_v44 }
  0x4e   :  { %v158_v47 = vmul.f32 0.003921569, %v156_v45 }
  0x4f   :  { %v157_v48 = vfloor.f32 %v155_v46 }
  0x50   :  { %v160_v49 = vmax.f32 %v158_v47, 0.0 }
  0x51   :  { %v159_v50 = vmul.f32 0.003921569, %v157_v48 }
  0x52   :  { %v162_v51 = vmin.f32 %v160_v49, 1.0 }
  0x53   :  { %v161_v37 = vmax.f32 %v159_v50, 0.0 }
  0x54   :  { %164 = vst [vmem:[#allocation7] sm:$0xff] %v162_v51 }
  0x55   :  { %v163_v52 = vmin.f32 %v161_v37, 1.0 }
  0x57   :  { %165 = vst [vmem:[#allocation7 + $0x8] sm:$0xff] %v163_v52 }
  0x58   :  { %224 = shalt.err (!%p221_p9)
}
  0x59   :  { %177 = dma.vmem_to_hbm [thread:$0]  %s172_s1, 256, %s297_s2, [#allocation6], %s238_s12, %s238_s12, %s239_s13  }
  0x5a   :  { %235 = dma.done.wait [#allocation6], 256  }
  0x5b   :  { %236 = vsyncadd [#allocation6], 4294967040 }
  0x5c   :  { %181 = vsyncpa [#allocation5], 1 }
  0x5d   :  { %182 = vsyncpa [#allocation6], 1 }

</bundles_post_ra>
